<compile_context>
chip_gen: v7x
topology: tpu7x:2x2x1
jax: 0.10.0
libtpu: 0.0.40
codegen_flags: <defaults>
</compile_context>

<pallas_src>
import math
import functools

import jax
import jax.numpy as jnp
from jax.experimental import pallas as pl
from jax.experimental.pallas import tpu as pltpu


def _balance_loss_kernel(x_ref, o_ref, sum_ref, acc_ref, *, target):
    # x_ref:   (tile_b, tile_r, 128) VMEM input tile (original dtype)
    # o_ref:   (1, 1, 1)             per-split scalar output
    # sum_ref: (tile_r, 128) f32     running sum over the batch axis
    # acc_ref: (tile_r, 128) f32     running elementwise |sum - target| accum
    r = pl.program_id(1)
    b = pl.program_id(2)
    nr = pl.num_programs(1)
    nb = pl.num_programs(2)

    @pl.when((r == 0) & (b == 0))
    def _():
        acc_ref[...] = jnp.zeros_like(acc_ref)

    @pl.when(b == 0)
    def _():
        sum_ref[...] = jnp.zeros_like(sum_ref)

    # Steady state: VPU adds only (f32 accumulation, bf16 inputs stay bf16 in HBM).
    x = x_ref[...].astype(jnp.float32)                 # (tile_b, tile_r, 128)
    sum_ref[...] += jnp.sum(x, axis=0)                 # (tile_r, 128)

    # End of batch sweep for this R tile: fold into the lane-dense accumulator.
    @pl.when(b == nb - 1)
    def _():
        acc_ref[...] += jnp.abs(sum_ref[...] - jnp.float32(target))

    # Per-split epilogue: single cross-lane reduce + tiny store.
    @pl.when((r == nr - 1) & (b == nb - 1))
    def _():
        o_ref[...] = jnp.sum(acc_ref[...], keepdims=True).reshape(1, 1, 1)


def _largest_divisor_leq(n, cap):
    cap = max(1, min(n, cap))
    for d in range(cap, 0, -1):
        if n % d == 0:
            return d
    return 1


def _largest_mult8_divisor_leq(r, cap):
    # r is a multiple of 8 here, so 8 always qualifies.
    best = 8
    for d in range(8, min(r, cap) + 1, 8):
        if r % d == 0:
            best = d
    return best


def balance_loss(x, num_branch):
    """x: any-rank array with a leading batch dim; returns scalar f32 loss."""
    B = x.shape[0]
    rest = math.prod(x.shape[1:])
    inv = 1.0 / num_branch

    x2 = x.reshape(B, rest)
    itemsize = x2.dtype.itemsize

    # Generation-aware VMEM budget (v5e/v6e: 128 MiB, v7x: 64 MiB per core).
    try:
        info = pltpu.get_tpu_info()
        vmem_cap = int(getattr(info, "vmem_capacity_bytes", 64 << 20))
    except Exception:
        vmem_cap = 64 << 20  # conservative default (v7x)
    per_buf_budget = min(16 << 20, vmem_cap // 8)          # per input buffer
    scratch_row_cap = max(8, (vmem_cap // 8) // (128 * 4 * 2))

    # Small batch tile (divisor of B) so VMEM does not scale with batch size.
    tile_b = _largest_divisor_leq(B, 8)
    max_rows = max(8, min(per_buf_budget // (tile_b * 128 * itemsize),
                          scratch_row_cap))

    # Pad the feature axis to a multiple of 128 with the neutral value
    # 1/num_branch (padded elements contribute 0 to the loss). If the feature
    # axis has to be tiled, pad further to a multiple of 1024 so the R tiles
    # stay (8,128)-aligned.
    padded = ((rest + 127) // 128) * 128
    R = padded // 128
    if R <= max_rows:
        tile_r = R
    else:
        padded = ((rest + 1023) // 1024) * 1024
        R = padded // 128
        tile_r = _largest_mult8_divisor_leq(R, max_rows)
    if padded != rest:
        x2 = jnp.pad(x2, ((0, 0), (0, padded - rest)), constant_values=inv)
    x3 = x2.reshape(B, R, 128)

    nr = R // tile_r
    nb = B // tile_b
    # v7x: split the R sweep across both TensorCores when it divides evenly.
    nsplit = 2 if (nr >= 2 and nr % 2 == 0) else 1
    nr_per = nr // nsplit

    block_bytes = tile_b * tile_r * 128 * itemsize
    scratch_bytes = 2 * tile_r * 128 * 4
    needed = 2 * block_bytes + scratch_bytes + (2 << 20)   # 2x: double-buffering
    vmem_limit = min(int(vmem_cap * 0.9), max(32 << 20, needed))

    kernel = functools.partial(_balance_loss_kernel, target=float(B) * inv)

    out = pl.pallas_call(
        kernel,
        out_shape=jax.ShapeDtypeStruct((nsplit, 1, 1), jnp.float32),
        grid_spec=pltpu.PrefetchScalarGridSpec(
            num_scalar_prefetch=0,
            grid=(nsplit, nr_per, nb),
            in_specs=[pl.BlockSpec(
                (tile_b, tile_r, 128),
                lambda c, r, b: (b, c * nr_per + r, 0))],
            out_specs=pl.BlockSpec((1, 1, 1), lambda c, r, b: (c, 0, 0)),
            scratch_shapes=[pltpu.VMEM((tile_r, 128), jnp.float32),
                            pltpu.VMEM((tile_r, 128), jnp.float32)],
        ),
        compiler_params=pltpu.CompilerParams(
            dimension_semantics=("parallel", "arbitrary", "arbitrary"),
            vmem_limit_bytes=vmem_limit),
    )(x3)
    return jnp.sum(out)


def balance_loss_ref(x, num_branch):
    w_u = jnp.zeros_like(x) + 1.0 / num_branch
    w_bar = jnp.mean(x, axis=0)
    return jnp.sum(jnp.abs(w_bar - w_u))


if __name__ == "__main__":
    num_branch = 4
    key = jax.random.PRNGKey(0)
    x = jax.random.uniform(key, (2, 4, 16, 16), dtype=jnp.float32)

    out = jax.block_until_ready(balance_loss(x, num_branch))
    ref = jax.block_until_ready(balance_loss_ref(x, num_branch))

    assert jnp.allclose(out, ref, rtol=1e-5, atol=1e-5), (out, ref)
    print("KERNEL_OK")
</pallas_src>

<mosaic_0001>
module attributes {stable_mosaic.version = 11 : i64} {
  func.func @_balance_loss_kernel(%arg0: i32, %arg1: i32, %arg2: i32, %arg3: memref<2x8x128xf32, #tpu.memory_space<vmem>>, %arg4: memref<1x1x1xf32, #tpu.memory_space<vmem>>, %arg5: memref<8x128xf32, #tpu.memory_space<vmem>>, %arg6: memref<8x128xf32, #tpu.memory_space<vmem>>) attributes {dimension_semantics = [#tpu.dimension_semantics<parallel>, #tpu.dimension_semantics<arbitrary>, #tpu.dimension_semantics<arbitrary>], iteration_bounds = array<i64: 1, 1, 1>, scalar_prefetch = 0 : i64, scratch_operands = 2 : i64, tpu.core_type = #tpu.core_type<tc>, window_params = [{transform_indices = @transform_0, window_bounds = array<i64: 2, 8, 128>}, {transform_indices = @transform_1, window_bounds = array<i64: 1, 1, 1>}]} {
    %c0_i32 = arith.constant 0 : i32
    %0 = arith.cmpi eq, %arg1, %c0_i32 : i32
    %c0_i32_0 = arith.constant 0 : i32
    %1 = arith.cmpi eq, %arg2, %c0_i32_0 : i32
    %2 = arith.andi %0, %1 : i1
    %3 = arith.extui %2 : i1 to i32
    %c0_i32_1 = arith.constant 0 : i32
    %4 = arith.cmpi ne, %3, %c0_i32_1 : i32
    scf.if %4 {
      %cst_15 = arith.constant 0.000000e+00 : f32
      %21 = vector.broadcast %cst_15 : f32 to vector<8x128xf32>
      %c0_16 = arith.constant 0 : index
      %c0_17 = arith.constant 0 : index
      %22 = vector.load %arg6[%c0_16, %c0_17] : memref<8x128xf32, #tpu.memory_space<vmem>>, vector<8x128xf32>
      tpu.vector_store %arg6[%c0_16, %c0_17], %21 {strides = array<i32>} : memref<8x128xf32, #tpu.memory_space<vmem>>, vector<8x128xf32>,
    } else {
    }
    %c0_i32_2 = arith.constant 0 : i32
    %5 = arith.cmpi eq, %arg2, %c0_i32_2 : i32
    %6 = arith.extui %5 : i1 to i32
    %c0_i32_3 = arith.constant 0 : i32
    %7 = arith.cmpi ne, %6, %c0_i32_3 : i32
    scf.if %7 {
      %cst_15 = arith.constant 0.000000e+00 : f32
      %21 = vector.broadcast %cst_15 : f32 to vector<8x128xf32>
      %c0_16 = arith.constant 0 : index
      %c0_17 = arith.constant 0 : index
      %22 = vector.load %arg5[%c0_16, %c0_17] : memref<8x128xf32, #tpu.memory_space<vmem>>, vector<8x128xf32>
      tpu.vector_store %arg5[%c0_16, %c0_17], %21 {strides = array<i32>} : memref<8x128xf32, #tpu.memory_space<vmem>>, vector<8x128xf32>,
    } else {
    }
    %c0 = arith.constant 0 : index
    %c0_4 = arith.constant 0 : index
    %c0_5 = arith.constant 0 : index
    %8 = vector.load %arg3[%c0, %c0_4, %c0_5] : memref<2x8x128xf32, #tpu.memory_space<vmem>>, vector<2x8x128xf32>
    %c0_6 = arith.constant 0 : index
    %c0_7 = arith.constant 0 : index
    %9 = vector.load %arg5[%c0_6, %c0_7] : memref<8x128xf32, #tpu.memory_space<vmem>>, vector<8x128xf32>
    %cst = arith.constant dense<0.000000e+00> : vector<8x128xf32>
    %10 = vector.multi_reduction <add>, %8, %cst [0] : vector<2x8x128xf32> to vector<8x128xf32>
    %11 = arith.addf %9, %10 : vector<8x128xf32>
    %c0_8 = arith.constant 0 : index
    %c0_9 = arith.constant 0 : index
    %12 = vector.load %arg5[%c0_8, %c0_9] : memref<8x128xf32, #tpu.memory_space<vmem>>, vector<8x128xf32>
    tpu.vector_store %arg5[%c0_8, %c0_9], %11 {strides = array<i32>} : memref<8x128xf32, #tpu.memory_space<vmem>>, vector<8x128xf32>,
    %c0_i32_10 = arith.constant 0 : i32
    %13 = arith.cmpi eq, %arg2, %c0_i32_10 : i32
    %14 = arith.extui %13 : i1 to i32
    %c0_i32_11 = arith.constant 0 : i32
    %15 = arith.cmpi ne, %14, %c0_i32_11 : i32
    scf.if %15 {
      %c0_15 = arith.constant 0 : index
      %c0_16 = arith.constant 0 : index
      %21 = vector.load %arg6[%c0_15, %c0_16] : memref<8x128xf32, #tpu.memory_space<vmem>>, vector<8x128xf32>
      %c0_17 = arith.constant 0 : index
      %c0_18 = arith.constant 0 : index
      %22 = vector.load %arg5[%c0_17, %c0_18] : memref<8x128xf32, #tpu.memory_space<vmem>>, vector<8x128xf32>
      %cst_19 = arith.constant 5.000000e-01 : f32
      %23 = vector.broadcast %cst_19 : f32 to vector<8x128xf32>
      %24 = arith.subf %22, %23 : vector<8x128xf32>
      %25 = math.absf %24 : vector<8x128xf32>
      %26 = arith.addf %21, %25 : vector<8x128xf32>
      %c0_20 = arith.constant 0 : index
      %c0_21 = arith.constant 0 : index
      %27 = vector.load %arg6[%c0_20, %c0_21] : memref<8x128xf32, #tpu.memory_space<vmem>>, vector<8x128xf32>
      tpu.vector_store %arg6[%c0_20, %c0_21], %26 {strides = array<i32>} : memref<8x128xf32, #tpu.memory_space<vmem>>, vector<8x128xf32>,
    } else {
    }
    %c0_i32_12 = arith.constant 0 : i32
    %16 = arith.cmpi eq, %arg1, %c0_i32_12 : i32
    %c0_i32_13 = arith.constant 0 : i32
    %17 = arith.cmpi eq, %arg2, %c0_i32_13 : i32
    %18 = arith.andi %16, %17 : i1
    %19 = arith.extui %18 : i1 to i32
    %c0_i32_14 = arith.constant 0 : i32
    %20 = arith.cmpi ne, %19, %c0_i32_14 : i32
    scf.if %20 {
      %c0_15 = arith.constant 0 : index
      %c0_16 = arith.constant 0 : index
      %21 = vector.load %arg6[%c0_15, %c0_16] : memref<8x128xf32, #tpu.memory_space<vmem>>, vector<8x128xf32>
      %22 = vector.shape_cast %21 : vector<8x128xf32> to vector<1x8x128xf32>
      %cst_17 = arith.constant dense<0.000000e+00> : vector<1xf32>
      %23 = vector.multi_reduction <add>, %22, %cst_17 [1, 2] : vector<1x8x128xf32> to vector<1xf32>
      %24 = vector.shape_cast %23 : vector<1xf32> to vector<1x1x1xf32>
      %25 = vector.extract %24[0, 0, 0] : f32 from vector<1x1x1xf32>
      %26 = vector.broadcast %25 : f32 to vector<1x1xf32>
      %27 = vector.shape_cast %26 : vector<1x1xf32> to vector<1x1x1xf32>
      %c0_18 = arith.constant 0 : index
      %c0_19 = arith.constant 0 : index
      %c0_20 = arith.constant 0 : index
      %28 = vector.load %arg4[%c0_18, %c0_19, %c0_20] : memref<1x1x1xf32, #tpu.memory_space<vmem>>, vector<1x1x1xf32>
      tpu.vector_store %arg4[%c0_18, %c0_19, %c0_20], %27 {strides = array<i32>} : memref<1x1x1xf32, #tpu.memory_space<vmem>>, vector<1x1x1xf32>,
    } else {
    }
    return
  }
  func.func @transform_0(%arg0: i32, %arg1: i32, %arg2: i32) -> (i32, i32, i32) {
    %c1_i32 = arith.constant 1 : i32
    %0 = arith.muli %arg0, %c1_i32 : i32
    %1 = arith.addi %0, %arg1 : i32
    %c0_i32 = arith.constant 0 : i32
    %c0_i32_0 = arith.constant 0 : i32
    return %arg2, %1, %c0_i32 : i32, i32, i32
  }
  func.func @transform_1(%arg0: i32, %arg1: i32, %arg2: i32) -> (i32, i32, i32) {
    %c0_i32 = arith.constant 0 : i32
    %c0_i32_0 = arith.constant 0 : i32
    %c0_i32_1 = arith.constant 0 : i32
    return %arg0, %c0_i32, %c0_i32_0 : i32, i32, i32
  }
}

</mosaic_0001>

<bundles_post_ra>
// kernel: tpu_custom_call.1
= control target key start
LH: loop header
LB: loop body
LE: loop exit
PB: predicated region body
PF: predicated region fallthrough
CT: control target
= control target key end

     0   :  { %6 = vsyncpa [#allocation5], 0  ;;  %s176_s0 = inlined_call_operand.hbm [shape: f32[2,8,128], index: 0, kind: input, shape index: {}]   ;;  %s177_s1 = inlined_call_operand.hbm [shape: f32[1,1,1], index: 1, kind: output, shape index: {}]  }
   0x1   :  { %7 = vsyncpa [#allocation6], 0  ;;  %s138_s6 = smov [#allocation4]   ;;  %s90_s10 = scalar_lea.hbm %s176_s0, 256 }
   0x2   :  { %s16_s7 = sshll.u32 %s138_s6, 4  ;;  %p91_p0 = scmp.ne.s32.totalorder %s176_s0, %s90_s10  ;;  %s17_s7 = int_to_ptr.vmem [resolvable:$true] %s16_s7 }
   0x3   :  { %p94_p1 = scmp.lt.u32.totalorder %s90_s10, %s176_s0 }
   0x5   :  { %p96_p2 = pnand %p94_p1, %p91_p0 }
   0x7   :  { %99 = shalt.err (!%p96_p2)
}
   0x8   :  { %s100_s15 = scalar_lea.vmem %s17_s7, 256  ;;  %p105_p4 = scmp.lt.s32.totalorder %s17_s7, %s17_s7 }
   0x9   :  { %p101_p3 = scmp.ne.s32.totalorder %s17_s7, %s100_s15  ;;  %p106_p5 = scmp.lt.s32.totalorder %s100_s15, %s100_s15 }
   0xb   :  { %p107_p6 = por %p106_p5, %p105_p4 }
   0xd   :  { %p108_p7 = pnand %p107_p6, %p101_p3 }
   0xf   :  { %111 = shalt.err (!%p108_p7)
}
  0x10   :  { %s139_s16 = smov 128   ;;  %s140_s17 = smov 8  }
  0x11   :  { %22 = dma.hbm_to_vmem [thread:$0]  %s176_s0, 256, %s17_s7, [#allocation5], %s139_s16, %s139_s16, %s140_s17  }
  0x12   :  { %134 = dma.done.wait [#allocation5], 256  }
  0x13   :  { %135 = vsyncadd [#allocation5], 4294967040  ;;  %v38_v0 = vld [vmem:[#allocation4] sm:$0xff]  ;;  %v39_v1 = vld [vmem:[#allocation4 + $0x8] sm:$0xff]  ;;  %s141_s20 = smov [#allocation7]   ;;  %vm66_vm0 = vcmask 0  }
  0x14   :  { %v41_v2 = vadd.f32 %v39_v1, %v38_v0  ;;  %s74_s21 = sshll.u32 %s141_s20, 4  ;;  %s75_s21 = int_to_ptr.vmem [resolvable:$true] %s74_s21 }
  0x15   :  { %s112_s22 = scalar_lea.vmem %s75_s21, 16  ;;  %s116_s23 = scalar_lea.vmem %s75_s21, 32 }
  0x16   :  { %v83_v3 = vadd.f32 -0.5, %v41_v2  ;;  %p113_p8 = scmp.ne.s32.totalorder %s75_s21, %s112_s22  ;;  %p117_p9 = scmp.lt.s32.totalorder %s75_s21, %s75_s21 }
  0x17   :  { %p118_p10 = scmp.lt.s32.totalorder %s116_s23, %s112_s22 }
  0x18   :  { %v50_v4 = vand.u32 2147483647, %v83_v3 }
  0x19   :  { %p119_p11 = por %p118_p10, %p117_p9 }
  0x1a   :  { %56 = vadd.xlane.f32.xlu0 %v50_v4 }
  0x1b   :  { %p120_p12 = pnand %p119_p11, %p113_p8 }
  0xa7   :  { %v57_v5 = vpop.xlane.xlu0 %56 }
  0xa8   :  { %v58_v6 = vrot.slane %v57_v5, 4 }
  0xaa   :  { %v59_v7 = vadd.f32 %v58_v6, %v57_v5 }
  0xac   :  { %v60_v8 = vrot.slane %v59_v7, 2 }
  0xae   :  { %v61_v9 = vadd.f32 %v60_v8, %v59_v7 }
  0xb0   :  { %v62_v10 = vrot.slane %v61_v9, 1 }
  0xb2   :  { %v63_v11 = vadd.f32 %v62_v10, %v61_v9 }
  0xb4   :  { %84 = vpush %v63_v11 }
  0xe5   :  { %s85_s0 = spop %84 }
  0xe6   :  { %v65_v12 = vstv %s85_s0 }
  0xe7   :  { %67 = vst.msk [vmem:[#allocation7] sm:$0x1] %vm66_vm0, %v65_v12 }
  0xe8   :  { %123 = shalt.err (!%p120_p12)
}
  0xe9   :  { %s124_s26 = scalar_lea.hbm %s177_s1, 16 }
  0xea   :  { %p125_p13 = scmp.ne.s32.totalorder %s177_s1, %s124_s26  ;;  %p128_p0 = scmp.lt.u32.totalorder %s124_s26, %s177_s1 }
  0xec   :  { %p130_p1 = pnand %p128_p0, %p125_p13 }
  0xee   :  { %133 = shalt.err (!%p130_p1)
}
  0xef   :  { %77 = dma.vmem_to_hbm [thread:$0]  %s75_s21, 16, %s177_s1, [#allocation6]  }
  0xf0   :  { %136 = dma.done.wait [#allocation6], 16  }
  0xf1   :  { %137 = vsyncadd [#allocation6], 4294967280 }
  0xf2   :  { %81 = vsyncpa [#allocation5], 1 }
  0xf3   :  { %82 = vsyncpa [#allocation6], 1 }

</bundles_post_ra>
